<compile_context>
chip_gen: v6e
topology: v6e:2x2x1
jax: 0.10.0
libtpu: 0.0.40
codegen_flags: <defaults>
</compile_context>

<pallas_src>
import functools

import jax
import jax.numpy as jnp
from jax import lax
from jax.experimental import pallas as pl
from jax.experimental.pallas import tpu as pltpu


_VMEM_LIMIT = 32 * 1024 * 1024


def _round_up(x, m):
    return ((x + m - 1) // m) * m


# ----------------------------------------------------------------------------
# Kernel 1: tiled matmul + bias + optional ReLU (1x1 convs, conv1's folded im2col)
# ----------------------------------------------------------------------------
def _matmul_bias_act_kernel(a_ref, w_ref, b_ref, o_ref, *, relu):
    acc = jnp.dot(a_ref[...], w_ref[...], preferred_element_type=jnp.float32)
    acc = acc + b_ref[...]
    if relu:
        acc = jnp.maximum(acc, 0.0)
    o_ref[...] = acc


def matmul_bias_act(a, w, b, *, relu, tile_m=512):
    """a: (M, K), w: (K, Cout), b: (Cout,). Returns (M, Cout) f32."""
    M, K = a.shape
    Cout = w.shape[1]
    tile_m = min(tile_m, _round_up(M, 8))
    m_pad = _round_up(M, tile_m)
    a = jnp.pad(a, ((0, m_pad - M), (0, 0))).astype(jnp.bfloat16)
    w = w.astype(jnp.bfloat16)
    b = b.reshape(1, Cout).astype(jnp.float32)
    out = pl.pallas_call(
        functools.partial(_matmul_bias_act_kernel, relu=relu),
        out_shape=jax.ShapeDtypeStruct((m_pad, Cout), jnp.float32),
        grid=(m_pad // tile_m,),
        in_specs=[
            pl.BlockSpec((tile_m, K), lambda i: (i, 0)),
            pl.BlockSpec((K, Cout), lambda i: (0, 0)),
            pl.BlockSpec((1, Cout), lambda i: (0, 0)),
        ],
        out_specs=pl.BlockSpec((tile_m, Cout), lambda i: (i, 0)),
        compiler_params=pltpu.CompilerParams(
            dimension_semantics=("parallel",),
            vmem_limit_bytes=_VMEM_LIMIT),
    )(a, w, b)
    return out[:M]


def conv2d_small_cin(x, w, b, *, relu, tile_m=512):
    """Valid conv, stride 1, for tiny Cin (conv1): fully folded im2col, single K dot."""
    N, H, W_, Cin = x.shape
    KH, KW, _, Cout = w.shape
    OH, OW = H - KH + 1, W_ - KW + 1
    M = N * OH * OW
    cols = [x[:, kh:kh + OH, kw:kw + OW, :].reshape(M, Cin)
            for kh in range(KH) for kw in range(KW)]
    patches = jnp.concatenate(cols, axis=-1)                 # (M, KH*KW*Cin)
    out = matmul_bias_act(patches, w.reshape(KH * KW * Cin, Cout), b,
                          relu=relu, tile_m=tile_m)
    return out.reshape(N, OH, OW, Cout)


def conv2d_1x1(x, w, b, *, relu, tile_m=512):
    """1x1 conv == plain matmul over flattened pixels (no im2col at all)."""
    N, H, W_, Cin = x.shape
    Cout = w.shape[-1]
    out = matmul_bias_act(x.reshape(N * H * W_, Cin), w.reshape(Cin, Cout), b,
                          relu=relu, tile_m=tile_m)
    return out.reshape(N, H, W_, Cout)


# ----------------------------------------------------------------------------
# Kernel 2: windowed conv for KH/KW > 1, Cin a multiple of 128 (conv2/conv4/conv5)
#   - KH row-shifted views of x are the pipelined inputs (no KH*KW im2col in HBM)
#   - the KW column windows are sliced in-kernel and folded into a K = KW*Cin dot
# ----------------------------------------------------------------------------
def _conv_window_kernel(*refs, kh_taps, kw_taps, ow, relu):
    xs = refs[:kh_taps]                                    # each (TR, W, Cin) bf16
    w_ref = refs[kh_taps]                                  # (KH, KW*Cin, Cout) bf16
    b_ref = refs[kh_taps + 1]                              # (1, Cout) f32
    o_ref = refs[kh_taps + 2]                              # (TR, OW, Cout) f32
    tr, _, cout = o_ref.shape

    acc = None
    for kh in range(kh_taps):
        xk = xs[kh][...]                                   # (TR, W, Cin)
        cin = xk.shape[-1]
        win = jnp.concatenate(
            [xk[:, kw:kw + ow, :] for kw in range(kw_taps)], axis=-1)
        win = win.reshape(tr * ow, kw_taps * cin)          # (TR*OW, KW*Cin)
        part = jnp.dot(win, w_ref[kh], preferred_element_type=jnp.float32)
        acc = part if acc is None else acc + part
    acc = acc + b_ref[...]
    if relu:
        acc = jnp.maximum(acc, 0.0)
    o_ref[...] = acc.reshape(tr, ow, cout)


def conv2d_window(x, w, b, *, relu, tile_rows=8):
    """Valid conv, stride 1, no padding.  x: (N,H,W,Cin), w: (KH,KW,Cin,Cout)."""
    N, H, W_, Cin = x.shape
    KH, KW, _, Cout = w.shape
    OH, OW = H - KH + 1, W_ - KW + 1
    Mr = N * OH                                            # flattened output rows
    tile_rows = min(tile_rows, _round_up(Mr, 8))
    mr_pad = _round_up(Mr, tile_rows)

    x = x.astype(jnp.bfloat16)
    views = []
    for kh in range(KH):                                   # KH row-shifted views only
        v = x[:, kh:kh + OH, :, :].reshape(Mr, W_, Cin)
        views.append(jnp.pad(v, ((0, mr_pad - Mr), (0, 0), (0, 0))))
    w2 = w.reshape(KH, KW * Cin, Cout).astype(jnp.bfloat16)
    b2 = b.reshape(1, Cout).astype(jnp.float32)

    in_specs = ([pl.BlockSpec((tile_rows, W_, Cin), lambda i: (i, 0, 0))] * KH
                + [pl.BlockSpec((KH, KW * Cin, Cout), lambda i: (0, 0, 0)),
                   pl.BlockSpec((1, Cout), lambda i: (0, 0))])

    out = pl.pallas_call(
        functools.partial(_conv_window_kernel, kh_taps=KH, kw_taps=KW,
                          ow=OW, relu=relu),
        out_shape=jax.ShapeDtypeStruct((mr_pad, OW, Cout), jnp.float32),
        grid=(mr_pad // tile_rows,),
        in_specs=in_specs,
        out_specs=pl.BlockSpec((tile_rows, OW, Cout), lambda i: (i, 0, 0)),
        compiler_params=pltpu.CompilerParams(
            dimension_semantics=("parallel",),
            vmem_limit_bytes=_VMEM_LIMIT),
    )(*views, w2, b2)
    return out[:Mr].reshape(N, OH, OW, Cout)


# ----------------------------------------------------------------------------
# Kernel 3: tiled 2x2 / stride-2 average pool (floor mode)
# ----------------------------------------------------------------------------
def _avgpool_kernel(a_ref, b_ref, c_ref, d_ref, o_ref):
    o_ref[...] = (a_ref[...] + b_ref[...] + c_ref[...] + d_ref[...]) * 0.25


def avgpool_2x2(x, *, tile_p=512):
    N, H, W_, C = x.shape
    OH, OW = H // 2, W_ // 2
    P = N * OH * OW
    tile_p = min(tile_p, _round_up(P, 8))
    p_pad = _round_up(P, tile_p)
    phases = []
    for dh in range(2):
        for dw in range(2):
            ph = x[:, dh:2 * OH:2, dw:2 * OW:2, :].reshape(P, C)
            phases.append(jnp.pad(ph, ((0, p_pad - P), (0, 0))))
    out = pl.pallas_call(
        _avgpool_kernel,
        out_shape=jax.ShapeDtypeStruct((p_pad, C), jnp.float32),
        grid=(p_pad // tile_p,),
        in_specs=[pl.BlockSpec((tile_p, C), lambda i: (i, 0))] * 4,
        out_specs=pl.BlockSpec((tile_p, C), lambda i: (i, 0)),
        compiler_params=pltpu.CompilerParams(
            dimension_semantics=("parallel",),
            vmem_limit_bytes=_VMEM_LIMIT),
    )(*phases)
    return out[:P].reshape(N, OH, OW, C)


# ----------------------------------------------------------------------------
# channel padding helpers (lane-dense outputs)
# ----------------------------------------------------------------------------
def _pad_out_channels(w, b, mult=128):
    cout = w.shape[-1]
    pad = (-cout) % mult
    if pad:
        w = jnp.pad(w, ((0, 0),) * (w.ndim - 1) + ((0, pad),))
        b = jnp.pad(b, ((0, pad),))
    return w, b


def _pad_in_channels(w, cin_target):
    cin = w.shape[2]
    if cin_target > cin:
        w = jnp.pad(w, ((0, 0), (0, 0), (0, cin_target - cin), (0, 0)))
    return w


# ----------------------------------------------------------------------------
# PDN_M forward (padding=False)
# ----------------------------------------------------------------------------
def pdn_m_forward(x_nchw, params, out_channels):
    x = jnp.transpose(x_nchw, (0, 2, 3, 1))                           # NCHW -> NHWC
    x = conv2d_small_cin(x, params["w1"], params["b1"], relu=True)    # 4x4,   3->256, ReLU
    x = avgpool_2x2(x)                                                # avgpool1
    x = conv2d_window(x, params["w2"], params["b2"], relu=True)       # 4x4, 256->512, ReLU
    x = avgpool_2x2(x)                                                # avgpool2
    x = conv2d_1x1(x, params["w3"], params["b3"], relu=True)          # 1x1, 512->512, ReLU
    x = conv2d_window(x, params["w4"], params["b4"], relu=True)       # 3x3, 512->512, ReLU
    w5, b5 = _pad_out_channels(params["w5"], params["b5"])            # lane-dense Cout
    x = conv2d_window(x, w5, b5, relu=True)                           # 4x4, 512->out, ReLU
    w6, b6 = _pad_out_channels(params["w6"], params["b6"])
    w6 = _pad_in_channels(w6, x.shape[-1])
    x = conv2d_1x1(x, w6, b6, relu=False)                             # 1x1, out->out
    x = x[..., :out_channels]
    return jnp.transpose(x, (0, 3, 1, 2))                             # NHWC -> NCHW


# ----------------------------------------------------------------------------
# Pure-JAX reference (same bf16 operand quantization, f32 accumulation)
# ----------------------------------------------------------------------------
def pdn_m_reference(x_nchw, params):
    dn = ("NHWC", "HWIO", "NHWC")

    def conv(x, w, b):
        y = lax.conv_general_dilated(
            x.astype(jnp.bfloat16), w.astype(jnp.bfloat16), (1, 1), "VALID",
            dimension_numbers=dn, preferred_element_type=jnp.float32)
        return y + b

    def pool(x):
        y = lax.reduce_window(x, 0.0, lax.add, (1, 2, 2, 1), (1, 2, 2, 1), "VALID")
        return y * 0.25

    x = jnp.transpose(x_nchw, (0, 2, 3, 1))
    x = jax.nn.relu(conv(x, params["w1"], params["b1"]))
    x = pool(x)
    x = jax.nn.relu(conv(x, params["w2"], params["b2"]))
    x = pool(x)
    x = jax.nn.relu(conv(x, params["w3"], params["b3"]))
    x = jax.nn.relu(conv(x, params["w4"], params["b4"]))
    x = jax.nn.relu(conv(x, params["w5"], params["b5"]))
    x = conv(x, params["w6"], params["b6"])
    return jnp.transpose(x, (0, 3, 1, 2))


if __name__ == "__main__":
    key = jax.random.PRNGKey(0)
    keys = jax.random.split(key, 8)

    out_channels = 64
    N, H, W = 2, 40, 40   # spatial trace: 40 ->37 ->18 ->15 ->7 ->7 ->5 ->2 ->2

    def init_conv(k, kh, kw, cin, cout):
        kw_key, kb_key = jax.random.split(k)
        bound = 1.0 / (cin * kh * kw) ** 0.5   # PyTorch default-style uniform bound
        wgt = jax.random.uniform(kw_key, (kh, kw, cin, cout), jnp.float32, -bound, bound)
        bia = jax.random.uniform(kb_key, (cout,), jnp.float32, -bound, bound)
        return wgt, bia

    w1, b1 = init_conv(keys[0], 4, 4, 3, 256)
    w2, b2 = init_conv(keys[1], 4, 4, 256, 512)
    w3, b3 = init_conv(keys[2], 1, 1, 512, 512)
    w4, b4 = init_conv(keys[3], 3, 3, 512, 512)
    w5, b5 = init_conv(keys[4], 4, 4, 512, out_channels)
    w6, b6 = init_conv(keys[5], 1, 1, out_channels, out_channels)
    params = dict(w1=w1, b1=b1, w2=w2, b2=b2, w3=w3, b3=b3,
                  w4=w4, b4=b4, w5=w5, b5=b5, w6=w6, b6=b6)

    x = jax.random.normal(keys[6], (N, 3, H, W), jnp.float32)

    out = jax.block_until_ready(pdn_m_forward(x, params, out_channels))
    ref = jax.block_until_ready(pdn_m_reference(x, params))

    assert out.shape == (N, out_channels, 2, 2), out.shape
    max_err = float(jnp.max(jnp.abs(out - ref)))
    assert jnp.allclose(out, ref, rtol=2e-2, atol=2e-2), max_err
    print("KERNEL_OK")
</pallas_src>

<mosaic_0001>
module attributes {stable_mosaic.version = 11 : i64} {
  func.func @_matmul_bias_act_kernel(%arg0: i32, %arg1: memref<512x48xbf16, #tpu.memory_space<vmem>>, %arg2: memref<48x256xbf16, #tpu.memory_space<vmem>>, %arg3: memref<1x256xf32, #tpu.memory_space<vmem>>, %arg4: memref<512x256xf32, #tpu.memory_space<vmem>>) attributes {dimension_semantics = [#tpu.dimension_semantics<parallel>], iteration_bounds = array<i64: 6>, scalar_prefetch = 0 : i64, scratch_operands = 0 : i64, tpu.core_type = #tpu.core_type<tc>, window_params = [{transform_indices = @transform_0, window_bounds = array<i64: 512, 48>}, {pipeline_mode = #tpu.pipeline_mode<synchronous>, transform_indices = @transform_1, window_bounds = array<i64: 48, 256>}, {pipeline_mode = #tpu.pipeline_mode<synchronous>, transform_indices = @transform_2, window_bounds = array<i64: 1, 256>}, {transform_indices = @transform_3, window_bounds = array<i64: 512, 256>}]} {
    %c0 = arith.constant 0 : index
    %c0_0 = arith.constant 0 : index
    %0 = vector.load %arg1[%c0, %c0_0] : memref<512x48xbf16, #tpu.memory_space<vmem>>, vector<512x48xbf16>
    %c0_1 = arith.constant 0 : index
    %c0_2 = arith.constant 0 : index
    %1 = vector.load %arg2[%c0_1, %c0_2] : memref<48x256xbf16, #tpu.memory_space<vmem>>, vector<48x256xbf16>
    %cst = arith.constant dense<0.000000e+00> : vector<512x256xf32>
    %2 = tpu.matmul %0, %1, %cst {dimension_numbers = #tpu.dot_dimension_numbers<[1], [0], [0], [1], [0, 0, 1, 1], [], []>} : vector<512x48xbf16>, vector<48x256xbf16>, vector<512x256xf32> -> vector<512x256xf32>
    %c0_3 = arith.constant 0 : index
    %c0_4 = arith.constant 0 : index
    %3 = vector.load %arg3[%c0_3, %c0_4] : memref<1x256xf32, #tpu.memory_space<vmem>>, vector<1x256xf32>
    %4 = vector.broadcast %3 : vector<1x256xf32> to vector<512x256xf32>
    %5 = arith.addf %2, %4 : vector<512x256xf32>
    %cst_5 = arith.constant 0.000000e+00 : f32
    %6 = vector.broadcast %cst_5 : f32 to vector<512x256xf32>
    %7 = arith.maximumf %5, %6 : vector<512x256xf32>
    %c0_6 = arith.constant 0 : index
    %c0_7 = arith.constant 0 : index
    %8 = vector.load %arg4[%c0_6, %c0_7] : memref<512x256xf32, #tpu.memory_space<vmem>>, vector<512x256xf32>
    tpu.vector_store %arg4[%c0_6, %c0_7], %7 {strides = array<i32>} : memref<512x256xf32, #tpu.memory_space<vmem>>, vector<512x256xf32>,
    return
  }
  func.func @transform_0(%arg0: i32) -> (i32, i32) {
    %c0_i32 = arith.constant 0 : i32
    %c0_i32_0 = arith.constant 0 : i32
    return %arg0, %c0_i32 : i32, i32
  }
  func.func @transform_1(%arg0: i32) -> (i32, i32) {
    %c0_i32 = arith.constant 0 : i32
    %c0_i32_0 = arith.constant 0 : i32
    %c0_i32_1 = arith.constant 0 : i32
    return %c0_i32, %c0_i32_0 : i32, i32
  }
  func.func @transform_2(%arg0: i32) -> (i32, i32) {
    %c0_i32 = arith.constant 0 : i32
    %c0_i32_0 = arith.constant 0 : i32
    %c0_i32_1 = arith.constant 0 : i32
    return %c0_i32, %c0_i32_0 : i32, i32
  }
  func.func @transform_3(%arg0: i32) -> (i32, i32) {
    %c0_i32 = arith.constant 0 : i32
    %c0_i32_0 = arith.constant 0 : i32
    return %arg0, %c0_i32 : i32, i32
  }
}

</mosaic_0001>

<bundles_post_ra>
// kernel: tpu_custom_call.1
= control target key start
LH: loop header
LB: loop body
LE: loop exit
PB: predicated region body
PF: predicated region fallthrough
CT: control target
= control target key end

     0   :  { %8 = vsyncpa [#allocation3], 0  ;;  %s2136_s0 = inlined_call_operand.vmem [shape: bf16[3072,48], index: 0, kind: input, shape index: {}]   ;;  %s2137_s1 = inlined_call_operand.hbm [shape: bf16[48,256], index: 1, kind: input, shape index: {}]   ;;  %s2138_s2 = inlined_call_operand.hbm [shape: f32[1,256], index: 2, kind: input, shape index: {}]   ;;  %s2139_s3 = inlined_call_operand.hbm [shape: f32[3072,256], index: 3, kind: output, shape index: {}]  }
   0x1   :  { %9 = vsyncpa [#allocation6], 0 }
   0x2   :  { %10 = vsyncpa [#allocation4], 0 }
   0x3   :  { %12 = vsyncpa [#allocation4 + $0x1], 0  ;;  %s1629_s12 = smov 0   ;;  %s1631_s13 = smov 0  }
   0x4   :  { %s1633_s14 = smov 0   ;;  %s1635_s15 = smov 0  }
   0x5 LB: > { %s1650_s16 = sadd.s32 4294967295, %s1599_s15   ;;  %s1278_s17 = sadd.s32 4294967294, %s1599_s15   ;;  %s1599_s15 = sphi %s1635_s15, %s2153_s15   ;;  %s1595_s14 = sphi %s1633_s14, %s2152_s14   ;;  %s1591_s13 = sphi %s1631_s13, %s2151_s13   ;;  %s1587_s12 = sphi %s1629_s12, %s2150_s12  }
   0x6   : > { %s1654_s18 = sadd.s32 1, %s1599_s15   ;;  %s93_s19 = sadd.s32 1, %s1595_s14 }
   0x7   : > { %s90_s20 = ssub.s32 %s1599_s15, %s1654_s18  ;;  %p103_p0 = scmp.ne.s32.totalorder %s1595_s14, %s1591_s13 }
   0x8   : > { %p91_p1 = scmp.eq.s32.totalorder %s90_s20, 0  ;;  %p104_p2 = scmp.eq.s32.totalorder %s1650_s16, 5 }
   0x9   : > { %p109_p3 = scmp.ne.s32.totalorder %s1591_s13, %s1587_s12  ;;  %p110_p4 = scmp.eq.s32.totalorder %s1278_s17, 5 }
   0xa   : > { %s1665_s21 = scalar_select %p91_p1, %s1595_s14, %s93_s19  }
   0xb   : > { %p1667_p5 = por %p104_p2, %p103_p0  ;;  %p1671_p6 = por %p110_p4, %p109_p3 }
   0xc   : > { %p1279_p7 = scmp.ge.s32.totalorder %s1599_s15, 1  ;;  %p117_p8 = scmp.lt.s32.totalorder %s1599_s15, 7 }
   0xd   : > { %s2142_s23 = scalar_select %p1671_p6, 1, 0 }
   0xe   : > { %p2140_p9 = scmp.eq.s32.totalorder %s1650_s16, 0  ;;  %p1678_p10 = pnand %p1279_p7, %p117_p8 }
   0xf   : > { %s1601_s25 = smov [#allocation2]   ;;  %s1602_s28 = smov [#allocation5]  }
  0x10   : > { %s129_s26 = sshll.u32 %s1601_s25, 4  ;;  %p1383_p11 = pneg %p1678_p10  ;;  %s130_s26 = int_to_ptr.vmem [resolvable:$true] %s129_s26 }
  0x11   : > { %s143_s29 = sshll.u32 %s1602_s28, 4  ;;  %s1490_s30 = scalar_lea.vmem %s130_s26, 768  ;;  %s144_s29 = int_to_ptr.vmem [resolvable:$true] %s143_s29 }
  0x12   : > { %p1686_p12 = pnand %p2140_p9, %p1383_p11  ;;  %p1491_p0 = scmp.ne.s32.totalorder %s130_s26, %s1490_s30 }
  0x13   : > { %p1498_p3 = scmp.lt.s32.totalorder %s130_s26, %s130_s26  ;;  %p1499_p4 = scmp.lt.s32.totalorder %s1490_s30, %s1490_s30 }
  0x14   : > { %p1481_p13 = pneg %p1686_p12 }
  0x15   : > { %p1500_p7 = por %p1499_p4, %p1498_p3 }
  0x16   : > { %p1493_p1 = pnand %p1491_p0, %p1481_p13 }
  0x18   : > { %p1494_p2 = pneg %p1493_p1 }
  0x1a   : > { %p1501_p8 = pnand %p1500_p7, %p1494_p2 }
  0x1c   : > { %1504 = shalt.err (!%p1501_p8)
}
  0x1d   : > { %s1603_s4 = smov 128   ;;  %s1604_s5 = smov 8  }
  0x1e   : > { %1386 = dma.hbm_to_vmem [thread:$0]  (!%p1686_p12), %s2137_s1, 768, %s130_s26, [#allocation3], %s1603_s4, %s1603_s4, %s1604_s5  }
  0x1f   : > { %s1516_s8 = scalar_lea.vmem %s144_s29, 32  ;;  %p1524_p9 = scmp.lt.s32.totalorder %s144_s29, %s144_s29 }
  0x20   : > { %p1517_p11 = scmp.ne.s32.totalorder %s144_s29, %s1516_s8  ;;  %p1525_p6 = scmp.lt.s32.totalorder %s1516_s8, %s1516_s8 }
  0x22   : > { %p1519_p0 = pnand %p1517_p11, %p1481_p13  ;;  %p1526_p3 = por %p1525_p6, %p1524_p9 }
  0x24   : > { %p1520_p1 = pneg %p1519_p0 }
  0x26   : > { %p1527_p2 = pnand %p1526_p3, %p1520_p1 }
  0x28   : > { %1530 = shalt.err (!%p1527_p2)
}
  0x29   : > { %1389 = dma.hbm_to_vmem [thread:$0]  (!%p1686_p12), %s2138_s2, 32, %s144_s29, [#allocation6]  }
  0x2a   : > { %165 = sbr.rel (%p1678_p10) target bundleno = 402 (0x192), region = 32  ;;  %p2145_p4 = scmp.eq.s32.totalorder (!%p1678_p10), %s1650_s16, 0 }
  0x2f   : > { %1574 = dma.done.wait (%p2145_p4), [#allocation3], 768   ;;  %p2146_p13 = pmov %p2145_p4 }
  0x30   : > { %p2147_p7 = pmov %p2145_p4 }
  0x31   : > { %1576 = vsyncadd (%p2146_p13), [#allocation3], 4294966528 }
  0x32   : > { %1578 = dma.done.wait (%p2147_p7), [#allocation6], 32   ;;  %p2148_p6 = pmov %p2145_p4 }
  0x33   : > { %s1287_s11 = sshll.u32 %s1650_s16, 6  ;;  %v1605_v0 = vmov 0   ;;  %v1438_v1 = vld [vmem:[#allocation2 + $0x24] ss:$8 sps:$4 sm:$0xff]   ;;  %v1440_v2 = vld [vmem:[#allocation2 + $0x20] ss:$8 sps:$4 sm:$0xff]   ;;  %v273_v39 = vlaneseq }
  0x34   : > { %1580 = vsyncadd (%p2148_p6), [#allocation6], 4294967264  ;;  %602 = vmatprep.mubr.bf16.mxu0 %v1605_v0  ;;  %762 = vmatprep.mubr.bf16.mxu1 %v1605_v0  ;;  %p194_p9 = scmp.lt.s32.totalorder %s1287_s11, 383  ;;  %v1441_v3 = vld [vmem:[#allocation2 + $0x14] ss:$8 sps:$4 sm:$0xff]   ;;  %vm473_vm0 = vcmask 392192  }
  0x35   : > { %580 = vmatprep.subr.bf16.mxu0 %v1438_v1  ;;  %1367 = vmatprep.subr.bf16.mxu1 %v1438_v1  ;;  %v1443_v4 = vld [vmem:[#allocation2 + $0x10] ss:$8 sps:$4 sm:$0xff]   ;;  %v1444_v5 = vld [vmem:[#allocation2 + $0x4] ss:$8 sps:$4 sm:$0xff]   ;;  %v1446_v6 = vld [vmem:[#allocation2] ss:$8 sps:$4 sm:$0xff]  }
  0x36   : > { %s2155_s11 = smov (!%p194_p9, %s1287_s11), 383  ;;  %581 = vmatpush1.bf16.msra.mxu0 %v1440_v2  ;;  %1370 = vmatpush1.bf16.msra.mxu1 %v1440_v2  ;;  %v274_v40 = vshrl.u32 %v273_v39, 7  ;;  %v271_v42 = vld [vmem:[#allocation5] sm:$0x3]  ;;  %s190_s25 = sand.u32 1, %s1591_s13  }
  0x37   : > { %s1288_s17 = sshll.u32 %s2155_s11, 2  ;;  %582 = vmatprep.subr.bf16.mxu0 %v1441_v3  ;;  %1368 = vmatprep.subr.bf16.mxu1 %v1441_v3  ;;  %s1286_s26 = sshll.u32 %s190_s25, 10 }
  0x38   : > { %s1724_s24 = scalar_lea.vmem %s2136_s0, %s1288_s17  ;;  %v275_v41 = vsub.s32 0, %v274_v40  ;;  %v279_v43 = vsub.s32 1, %v274_v40  ;;  %s1831_s27 = scalar_lea.vmem [#allocation7], %s1286_s26 }
  0x39   : > { %v1447_v7 = vld [vmem:[%s1724_s24] sm:$0xff]   ;;  %v1449_v9 = vld [vmem:[%s1724_s24 + $0x8] sm:$0xff]   ;;  %v1451_v11 = vld [vmem:[%s1724_s24 + $0x10] sm:$0xff]   ;;  %s1366_s28 = sshll.u32 %s1650_s16, 14  ;;  %s1194_s29 = sshll.u32 %s1831_s27, 4  ;;  %s2088_s29 = int_to_ptr.vmem [resolvable:$true] %s1194_s29 }
  0x3a   : > { %583 = vmatpush1.bf16.msra.mxu0 %v1443_v4  ;;  %1371 = vmatpush1.bf16.msra.mxu1 %v1443_v4  ;;  %v1448_v8 = vld [vmem:[%s1724_s24 + $0x80] sm:$0xff]   ;;  %v1450_v10 = vld [vmem:[%s1724_s24 + $0x88] sm:$0xff]   ;;  %v1452_v12 = vld [vmem:[%s1724_s24 + $0x90] sm:$0xff]   ;;  %v1821_v44 = vrot.slane %v271_v42, %v275_v41  ;;  %v1825_v45 = vrot.slane %v271_v42, %v279_v43  ;;  %s2086_s5 = scalar_lea.hbm %s2139_s3, %s1366_s28  ;;  %s2096_s16 = scalar_lea.sflag [#allocation4], %s190_s25 }
  0x3b   : > { %584 = vmatprep.subr.bf16.mxu0 %v1444_v5  ;;  %1369 = vmatprep.subr.bf16.mxu1 %v1444_v5  ;;  %v1453_v13 = vld [vmem:[%s1724_s24 + $0x18] sm:$0xff]   ;;  %v1455_v15 = vld [vmem:[%s1724_s24 + $0x20] sm:$0xff]   ;;  %v1457_v17 = vld [vmem:[%s1724_s24 + $0x28] sm:$0xff]   ;;  %s1531_s6 = scalar_lea.vmem %s2088_s29, 16384  ;;  %s1606_s7 = smov [#allocation7]  }
  0x3c   : > { %v1454_v14 = vld [vmem:[%s1724_s24 + $0x98] sm:$0xff]   ;;  %v1456_v16 = vld [vmem:[%s1724_s24 + $0xa0] sm:$0xff]   ;;  %v1458_v18 = vld [vmem:[%s1724_s24 + $0xa8] sm:$0xff]   ;;  %p1532_p10 = scmp.ne.s32.totalorder %s2088_s29, %s1531_s6  ;;  %s1535_s8 = sshll.u32 %s1606_s7, 4  ;;  %s1536_s8 = int_to_ptr.vmem [resolvable:$false] %s1535_s8 }
  0x3d   : > { %v1459_v19 = vld [vmem:[%s1724_s24 + $0x30] sm:$0xff]   ;;  %v1461_v21 = vld [vmem:[%s1724_s24 + $0x38] sm:$0xff]   ;;  %v1463_v23 = vld [vmem:[%s1724_s24 + $0x40] sm:$0xff]   ;;  %s1537_s9 = scalar_lea.vmem %s1536_s8, 32768  ;;  %p1538_p11 = scmp.lt.s32.totalorder %s2088_s29, %s1536_s8 }
  0x3e   : > { %585 = vmatpush1.bf16.msra.mxu0 %v1446_v6  ;;  %1372 = vmatpush1.bf16.msra.mxu1 %v1446_v6  ;;  %v1460_v20 = vld [vmem:[%s1724_s24 + $0xb0] sm:$0xff]   ;;  %v1462_v22 = vld [vmem:[%s1724_s24 + $0xb8] sm:$0xff]   ;;  %v1464_v24 = vld [vmem:[%s1724_s24 + $0xc0] sm:$0xff]   ;;  %p1533_p12 = pnand %p1532_p10, %p1667_p5  ;;  %p1539_p0 = scmp.lt.s32.totalorder %s1537_s9, %s1531_s6 }
  0x3f   : > { %v1465_v25 = vld [vmem:[%s1724_s24 + $0x48] sm:$0xff]   ;;  %v1467_v27 = vld [vmem:[%s1724_s24 + $0x50] sm:$0xff]   ;;  %v1469_v29 = vld [vmem:[%s1724_s24 + $0x58] sm:$0xff]  }
  0x40   : > { %v1466_v26 = vld [vmem:[%s1724_s24 + $0xc8] sm:$0xff]   ;;  %v1468_v28 = vld [vmem:[%s1724_s24 + $0xd0] sm:$0xff]   ;;  %v1470_v30 = vld [vmem:[%s1724_s24 + $0xd8] sm:$0xff]   ;;  %p1534_p8 = pneg %p1533_p12  ;;  %p1540_p1 = por %p1539_p0, %p1538_p11 }
  0x41   : > { %1327 = vmatmul.mubr.msk.bf16.vlgmr.msra.gmra.mxu0 %vm473_vm0, %v1447_v7  ;;  %1343 = vmatmul.mubr.msk.bf16.vlgmr.msra.gmra.mxu1 %vm473_vm0, %v1448_v8  ;;  %v1471_v31 = vld [vmem:[%s1724_s24 + $0x60] sm:$0xff]   ;;  %v1473_v33 = vld [vmem:[%s1724_s24 + $0x68] sm:$0xff]   ;;  %v1475_v35 = vld [vmem:[%s1724_s24 + $0x70] sm:$0xff]  }
  0x42   : > { %612 = vmatprep.mubr.bf16.mxu0 %v1605_v0  ;;  %772 = vmatprep.mubr.bf16.mxu1 %v1605_v0  ;;  %v1472_v32 = vld [vmem:[%s1724_s24 + $0xe0] sm:$0xff]   ;;  %v1474_v34 = vld [vmem:[%s1724_s24 + $0xe8] sm:$0xff]   ;;  %v1476_v36 = vld [vmem:[%s1724_s24 + $0xf0] sm:$0xff]   ;;  %p1541_p3 = pnand %p1540_p1, %p1534_p8 }
  0x43   : > { %v1477_v37 = vld [vmem:[%s1724_s24 + $0x78] sm:$0xff]  }
  0x44   : > { %v1478_v38 = vld [vmem:[%s1724_s24 + $0xf8] sm:$0xff]  }
  0x49   : > { %1328 = vmatmul.mubr.msk.bf16.gmra.mxu0 %vm473_vm0, %v1449_v9  ;;  %1344 = vmatmul.mubr.msk.bf16.gmra.mxu1 %vm473_vm0, %v1450_v10 }
  0x4a   : > { %622 = vmatprep.mubr.bf16.mxu0 %v1605_v0  ;;  %782 = vmatprep.mubr.bf16.mxu1 %v1605_v0 }
  0x51   : > { %1329 = vmatmul.mubr.msk.bf16.gmra.mxu0 %vm473_vm0, %v1451_v11  ;;  %1345 = vmatmul.mubr.msk.bf16.gmra.mxu1 %vm473_vm0, %v1452_v12 }
  0x52   : > { %632 = vmatprep.mubr.bf16.mxu0 %v1605_v0  ;;  %792 = vmatprep.mubr.bf16.mxu1 %v1605_v0 }
  0x59   : > { %1330 = vmatmul.mubr.msk.bf16.gmra.mxu0 %vm473_vm0, %v1453_v13  ;;  %1346 = vmatmul.mubr.msk.bf16.gmra.mxu1 %vm473_vm0, %v1454_v14 }
  0x5a   : > { %642 = vmatprep.mubr.bf16.mxu0 %v1605_v0  ;;  %802 = vmatprep.mubr.bf16.mxu1 %v1605_v0 }
  0x61   : > { %1331 = vmatmul.mubr.msk.bf16.gmra.mxu0 %vm473_vm0, %v1455_v15  ;;  %1347 = vmatmul.mubr.msk.bf16.gmra.mxu1 %vm473_vm0, %v1456_v16 }
  0x62   : > { %652 = vmatprep.mubr.bf16.mxu0 %v1605_v0  ;;  %812 = vmatprep.mubr.bf16.mxu1 %v1605_v0 }
  0x69   : > { %1332 = vmatmul.mubr.msk.bf16.gmra.mxu0 %vm473_vm0, %v1457_v17  ;;  %1348 = vmatmul.mubr.msk.bf16.gmra.mxu1 %vm473_vm0, %v1458_v18 }
  0x6a   : > { %662 = vmatprep.mubr.bf16.mxu0 %v1605_v0  ;;  %822 = vmatprep.mubr.bf16.mxu1 %v1605_v0 }
  0x71   : > { %1333 = vmatmul.mubr.msk.bf16.gmra.mxu0 %vm473_vm0, %v1459_v19  ;;  %1349 = vmatmul.mubr.msk.bf16.gmra.mxu1 %vm473_vm0, %v1460_v20 }
  0x72   : > { %672 = vmatprep.mubr.bf16.mxu0 %v1605_v0  ;;  %832 = vmatprep.mubr.bf16.mxu1 %v1605_v0 }
  0x79   : > { %1334 = vmatmul.mubr.msk.bf16.gmra.mxu0 %vm473_vm0, %v1461_v21  ;;  %1350 = vmatmul.mubr.msk.bf16.gmra.mxu1 %vm473_vm0, %v1462_v22 }
  0x7a   : > { %682 = vmatprep.mubr.bf16.mxu0 %v1605_v0  ;;  %842 = vmatprep.mubr.bf16.mxu1 %v1605_v0 }
  0x81   : > { %1335 = vmatmul.mubr.msk.bf16.gmra.mxu0 %vm473_vm0, %v1463_v23  ;;  %1351 = vmatmul.mubr.msk.bf16.gmra.mxu1 %vm473_vm0, %v1464_v24 }
  0x82   : > { %692 = vmatprep.mubr.bf16.mxu0 %v1605_v0  ;;  %852 = vmatprep.mubr.bf16.mxu1 %v1605_v0 }
  0x89   : > { %1336 = vmatmul.mubr.msk.bf16.gmra.mxu0 %vm473_vm0, %v1465_v25  ;;  %1352 = vmatmul.mubr.msk.bf16.gmra.mxu1 %vm473_vm0, %v1466_v26 }
  0x8a   : > { %702 = vmatprep.mubr.bf16.mxu0 %v1605_v0  ;;  %862 = vmatprep.mubr.bf16.mxu1 %v1605_v0 }
  0x91   : > { %1337 = vmatmul.mubr.msk.bf16.gmra.mxu0 %vm473_vm0, %v1467_v27  ;;  %1353 = vmatmul.mubr.msk.bf16.gmra.mxu1 %vm473_vm0, %v1468_v28 }
  0x92   : > { %712 = vmatprep.mubr.bf16.mxu0 %v1605_v0  ;;  %872 = vmatprep.mubr.bf16.mxu1 %v1605_v0 }
  0x99   : > { %1338 = vmatmul.mubr.msk.bf16.gmra.mxu0 %vm473_vm0, %v1469_v29  ;;  %1354 = vmatmul.mubr.msk.bf16.gmra.mxu1 %vm473_vm0, %v1470_v30 }
  0x9a   : > { %722 = vmatprep.mubr.bf16.mxu0 %v1605_v0  ;;  %882 = vmatprep.mubr.bf16.mxu1 %v1605_v0 }
  0xa1   : > { %1339 = vmatmul.mubr.msk.bf16.gmra.mxu0 %vm473_vm0, %v1471_v31  ;;  %1355 = vmatmul.mubr.msk.bf16.gmra.mxu1 %vm473_vm0, %v1472_v32 }
  0xa2   : > { %732 = vmatprep.mubr.bf16.mxu0 %v1605_v0  ;;  %892 = vmatprep.mubr.bf16.mxu1 %v1605_v0 }
  0xa9   : > { %1340 = vmatmul.mubr.msk.bf16.gmra.mxu0 %vm473_vm0, %v1473_v33  ;;  %1356 = vmatmul.mubr.msk.bf16.gmra.mxu1 %vm473_vm0, %v1474_v34 }
  0xaa   : > { %742 = vmatprep.mubr.bf16.mxu0 %v1605_v0  ;;  %902 = vmatprep.mubr.bf16.mxu1 %v1605_v0 }
  0xb1   : > { %1341 = vmatmul.mubr.msk.bf16.gmra.mxu0 %vm473_vm0, %v1475_v35  ;;  %1357 = vmatmul.mubr.msk.bf16.gmra.mxu1 %vm473_vm0, %v1476_v36 }
  0xb2   : > { %752 = vmatprep.mubr.bf16.mxu0 %v1605_v0  ;;  %912 = vmatprep.mubr.bf16.mxu1 %v1605_v0 }
  0xb9   : > { %1342 = vmatmul.mubr.msk.bf16.gmra.mxu0 %vm473_vm0, %v1477_v37  ;;  %1358 = vmatmul.mubr.msk.bf16.gmra.mxu1 %vm473_vm0, %v1478_v38 }
 0x101   : > { %v604_v46 = vpop.f32.mrf.mxu0  ;;  %v764_v47 = vpop.f32.mrf.mxu1 }
 0x102   : > { %v605_v48 = vadd.f32 %v604_v46, %v1821_v44  ;;  %v765_v49 = vadd.f32 %v764_v47, %v1821_v44 }
 0x103   : > { %v606_v50 = vpop.f32.mrf.mxu0  ;;  %v766_v51 = vpop.f32.mrf.mxu1 }
 0x104   : > { %v923_v52 = vmax.f32 %v605_v48, 0.0  ;;  %v987_v53 = vmax.f32 %v765_v49, 0.0  ;;  %v607_v54 = vadd.f32 %v606_v50, %v1825_v45  ;;  %v767_v55 = vadd.f32 %v766_v51, %v1825_v45 }
 0x105   : > { %v608_v56 = vpop.f32.mrf.mxu0  ;;  %v768_v57 = vpop.f32.mrf.mxu1 }
 0x106   : > { %1051 = vst [vmem:[%s1831_s27] sm:$0xff] %v923_v52  ;;  %1115 = vst [vmem:[%s1831_s27 + $0x200] sm:$0xff] %v987_v53  ;;  %v924_v58 = vmax.f32 %v607_v54, 0.0  ;;  %v988_v59 = vmax.f32 %v767_v55, 0.0  ;;  %v609_v60 = vadd.f32 %v608_v56, %v1821_v44  ;;  %v769_v61 = vadd.f32 %v768_v57, %v1821_v44 }
 0x107   : > { %v610_v62 = vpop.f32.mrf.mxu0  ;;  %v770_v63 = vpop.f32.mrf.mxu1 }
 0x108   : > { %1052 = vst [vmem:[%s1831_s27 + $0x8] sm:$0xff] %v924_v58  ;;  %1116 = vst [vmem:[%s1831_s27 + $0x208] sm:$0xff] %v988_v59  ;;  %v925_v0 = vmax.f32 %v609_v60, 0.0  ;;  %v989_v1 = vmax.f32 %v769_v61, 0.0  ;;  %v611_v2 = vadd.f32 %v610_v62, %v1825_v45  ;;  %v771_v3 = vadd.f32 %v770_v63, %v1825_v45 }
 0x109   : > { %v614_v4 = vpop.f32.mrf.mxu0  ;;  %v774_v5 = vpop.f32.mrf.mxu1 }
 0x10a   : > { %1053 = vst [vmem:[%s1831_s27 + $0x10] sm:$0xff] %v925_v0  ;;  %1117 = vst [vmem:[%s1831_s27 + $0x210] sm:$0xff] %v989_v1  ;;  %v926_v6 = vmax.f32 %v611_v2, 0.0  ;;  %v990_v7 = vmax.f32 %v771_v3, 0.0  ;;  %v615_v8 = vadd.f32 %v614_v4, %v1821_v44  ;;  %v775_v9 = vadd.f32 %v774_v5, %v1821_v44 }
 0x10b   : > { %v616_v10 = vpop.f32.mrf.mxu0  ;;  %v776_v11 = vpop.f32.mrf.mxu1 }
 0x10c   : > { %1054 = vst [vmem:[%s1831_s27 + $0x18] sm:$0xff] %v926_v6  ;;  %1118 = vst [vmem:[%s1831_s27 + $0x218] sm:$0xff] %v990_v7  ;;  %v927_v12 = vmax.f32 %v615_v8, 0.0  ;;  %v991_v13 = vmax.f32 %v775_v9, 0.0  ;;  %v617_v14 = vadd.f32 %v616_v10, %v1825_v45  ;;  %v777_v15 = vadd.f32 %v776_v11, %v1825_v45 }
 0x10d   : > { %v618_v16 = vpop.f32.mrf.mxu0  ;;  %v778_v17 = vpop.f32.mrf.mxu1 }
 0x10e   : > { %1055 = vst [vmem:[%s1831_s27 + $0x20] sm:$0xff] %v927_v12  ;;  %1119 = vst [vmem:[%s1831_s27 + $0x220] sm:$0xff] %v991_v13  ;;  %v928_v18 = vmax.f32 %v617_v14, 0.0  ;;  %v992_v19 = vmax.f32 %v777_v15, 0.0  ;;  %v619_v20 = vadd.f32 %v618_v16, %v1821_v44  ;;  %v779_v21 = vadd.f32 %v778_v17, %v1821_v44 }
 0x10f   : > { %v620_v22 = vpop.f32.mrf.mxu0  ;;  %v780_v23 = vpop.f32.mrf.mxu1 }
 0x110   : > { %1056 = vst [vmem:[%s1831_s27 + $0x28] sm:$0xff] %v928_v18  ;;  %1120 = vst [vmem:[%s1831_s27 + $0x228] sm:$0xff] %v992_v19  ;;  %v929_v24 = vmax.f32 %v619_v20, 0.0  ;;  %v993_v25 = vmax.f32 %v779_v21, 0.0  ;;  %v621_v26 = vadd.f32 %v620_v22, %v1825_v45  ;;  %v781_v27 = vadd.f32 %v780_v23, %v1825_v45 }
 0x111   : > { %v624_v28 = vpop.f32.mrf.mxu0  ;;  %v784_v29 = vpop.f32.mrf.mxu1 }
 0x112   : > { %1057 = vst [vmem:[%s1831_s27 + $0x30] sm:$0xff] %v929_v24  ;;  %1121 = vst [vmem:[%s1831_s27 + $0x230] sm:$0xff] %v993_v25  ;;  %v930_v30 = vmax.f32 %v621_v26, 0.0  ;;  %v994_v31 = vmax.f32 %v781_v27, 0.0  ;;  %v625_v32 = vadd.f32 %v624_v28, %v1821_v44  ;;  %v785_v33 = vadd.f32 %v784_v29, %v1821_v44 }
 0x113   : > { %v626_v34 = vpop.f32.mrf.mxu0  ;;  %v786_v35 = vpop.f32.mrf.mxu1 }
 0x114   : > { %1058 = vst [vmem:[%s1831_s27 + $0x38] sm:$0xff] %v930_v30  ;;  %1122 = vst [vmem:[%s1831_s27 + $0x238] sm:$0xff] %v994_v31  ;;  %v931_v36 = vmax.f32 %v625_v32, 0.0  ;;  %v995_v37 = vmax.f32 %v785_v33, 0.0  ;;  %v627_v38 = vadd.f32 %v626_v34, %v1825_v45  ;;  %v787_v39 = vadd.f32 %v786_v35, %v1825_v45 }
 0x115   : > { %v628_v40 = vpop.f32.mrf.mxu0  ;;  %v788_v41 = vpop.f32.mrf.mxu1 }
 0x116   : > { %1059 = vst [vmem:[%s1831_s27 + $0x40] sm:$0xff] %v931_v36  ;;  %1123 = vst [vmem:[%s1831_s27 + $0x240] sm:$0xff] %v995_v37  ;;  %v932_v42 = vmax.f32 %v627_v38, 0.0  ;;  %v996_v43 = vmax.f32 %v787_v39, 0.0  ;;  %v629_v46 = vadd.f32 %v628_v40, %v1821_v44  ;;  %v789_v47 = vadd.f32 %v788_v41, %v1821_v44 }
 0x117   : > { %v630_v48 = vpop.f32.mrf.mxu0  ;;  %v790_v49 = vpop.f32.mrf.mxu1 }
 0x118   : > { %1060 = vst [vmem:[%s1831_s27 + $0x48] sm:$0xff] %v932_v42  ;;  %1124 = vst [vmem:[%s1831_s27 + $0x248] sm:$0xff] %v996_v43  ;;  %v933_v50 = vmax.f32 %v629_v46, 0.0  ;;  %v997_v51 = vmax.f32 %v789_v47, 0.0  ;;  %v631_v52 = vadd.f32 %v630_v48, %v1825_v45  ;;  %v791_v53 = vadd.f32 %v790_v49, %v1825_v45 }
 0x119   : > { %v634_v54 = vpop.f32.mrf.mxu0  ;;  %v794_v55 = vpop.f32.mrf.mxu1 }
 0x11a   : > { %1061 = vst [vmem:[%s1831_s27 + $0x50] sm:$0xff] %v933_v50  ;;  %1125 = vst [vmem:[%s1831_s27 + $0x250] sm:$0xff] %v997_v51  ;;  %v934_v56 = vmax.f32 %v631_v52, 0.0  ;;  %v998_v57 = vmax.f32 %v791_v53, 0.0  ;;  %v635_v58 = vadd.f32 %v634_v54, %v1821_v44  ;;  %v795_v59 = vadd.f32 %v794_v55, %v1821_v44 }
 0x11b   : > { %v636_v60 = vpop.f32.mrf.mxu0  ;;  %v796_v61 = vpop.f32.mrf.mxu1 }
 0x11c   : > { %1062 = vst [vmem:[%s1831_s27 + $0x58] sm:$0xff] %v934_v56  ;;  %1126 = vst [vmem:[%s1831_s27 + $0x258] sm:$0xff] %v998_v57  ;;  %v935_v62 = vmax.f32 %v635_v58, 0.0  ;;  %v999_v63 = vmax.f32 %v795_v59, 0.0  ;;  %v637_v0 = vadd.f32 %v636_v60, %v1825_v45  ;;  %v797_v1 = vadd.f32 %v796_v61, %v1825_v45 }
 0x11d   : > { %v638_v2 = vpop.f32.mrf.mxu0  ;;  %v798_v3 = vpop.f32.mrf.mxu1 }
 0x11e   : > { %1063 = vst [vmem:[%s1831_s27 + $0x60] sm:$0xff] %v935_v62  ;;  %1127 = vst [vmem:[%s1831_s27 + $0x260] sm:$0xff] %v999_v63  ;;  %v936_v4 = vmax.f32 %v637_v0, 0.0  ;;  %v1000_v5 = vmax.f32 %v797_v1, 0.0  ;;  %v639_v6 = vadd.f32 %v638_v2, %v1821_v44  ;;  %v799_v7 = vadd.f32 %v798_v3, %v1821_v44 }
 0x11f   : > { %v640_v8 = vpop.f32.mrf.mxu0  ;;  %v800_v9 = vpop.f32.mrf.mxu1 }
 0x120   : > { %1064 = vst [vmem:[%s1831_s27 + $0x68] sm:$0xff] %v936_v4  ;;  %1128 = vst [vmem:[%s1831_s27 + $0x268] sm:$0xff] %v1000_v5  ;;  %v937_v10 = vmax.f32 %v639_v6, 0.0  ;;  %v1001_v11 = vmax.f32 %v799_v7, 0.0  ;;  %v641_v12 = vadd.f32 %v640_v8, %v1825_v45  ;;  %v801_v13 = vadd.f32 %v800_v9, %v1825_v45 }
 0x121   : > { %v644_v14 = vpop.f32.mrf.mxu0  ;;  %v804_v15 = vpop.f32.mrf.mxu1 }
 0x122   : > { %1065 = vst [vmem:[%s1831_s27 + $0x70] sm:$0xff] %v937_v10  ;;  %1129 = vst [vmem:[%s1831_s27 + $0x270] sm:$0xff] %v1001_v11  ;;  %v938_v16 = vmax.f32 %v641_v12, 0.0  ;;  %v1002_v17 = vmax.f32 %v801_v13, 0.0  ;;  %v645_v18 = vadd.f32 %v644_v14, %v1821_v44  ;;  %v805_v19 = vadd.f32 %v804_v15, %v1821_v44 }
 0x123   : > { %v646_v20 = vpop.f32.mrf.mxu0  ;;  %v806_v21 = vpop.f32.mrf.mxu1 }
 0x124   : > { %1066 = vst [vmem:[%s1831_s27 + $0x78] sm:$0xff] %v938_v16  ;;  %1130 = vst [vmem:[%s1831_s27 + $0x278] sm:$0xff] %v1002_v17  ;;  %v939_v22 = vmax.f32 %v645_v18, 0.0  ;;  %v1003_v23 = vmax.f32 %v805_v19, 0.0  ;;  %v647_v24 = vadd.f32 %v646_v20, %v1825_v45  ;;  %v807_v25 = vadd.f32 %v806_v21, %v1825_v45 }
 0x125   : > { %v648_v26 = vpop.f32.mrf.mxu0  ;;  %v808_v27 = vpop.f32.mrf.mxu1 }
 0x126   : > { %1067 = vst [vmem:[%s1831_s27 + $0x80] sm:$0xff] %v939_v22  ;;  %1131 = vst [vmem:[%s1831_s27 + $0x280] sm:$0xff] %v1003_v23  ;;  %v940_v28 = vmax.f32 %v647_v24, 0.0  ;;  %v1004_v29 = vmax.f32 %v807_v25, 0.0  ;;  %v649_v30 = vadd.f32 %v648_v26, %v1821_v44  ;;  %v809_v31 = vadd.f32 %v808_v27, %v1821_v44 }
 0x127   : > { %v650_v32 = vpop.f32.mrf.mxu0  ;;  %v810_v33 = vpop.f32.mrf.mxu1 }
 0x128   : > { %1068 = vst [vmem:[%s1831_s27 + $0x88] sm:$0xff] %v940_v28  ;;  %1132 = vst [vmem:[%s1831_s27 + $0x288] sm:$0xff] %v1004_v29  ;;  %v941_v34 = vmax.f32 %v649_v30, 0.0  ;;  %v1005_v35 = vmax.f32 %v809_v31, 0.0  ;;  %v651_v36 = vadd.f32 %v650_v32, %v1825_v45  ;;  %v811_v37 = vadd.f32 %v810_v33, %v1825_v45 }
 0x129   : > { %v654_v38 = vpop.f32.mrf.mxu0  ;;  %v814_v39 = vpop.f32.mrf.mxu1 }
 0x12a   : > { %1069 = vst [vmem:[%s1831_s27 + $0x90] sm:$0xff] %v941_v34  ;;  %1133 = vst [vmem:[%s1831_s27 + $0x290] sm:$0xff] %v1005_v35  ;;  %v942_v40 = vmax.f32 %v651_v36, 0.0  ;;  %v1006_v41 = vmax.f32 %v811_v37, 0.0  ;;  %v655_v42 = vadd.f32 %v654_v38, %v1821_v44  ;;  %v815_v43 = vadd.f32 %v814_v39, %v1821_v44 }
 0x12b   : > { %v656_v46 = vpop.f32.mrf.mxu0  ;;  %v816_v47 = vpop.f32.mrf.mxu1 }
 0x12c   : > { %1070 = vst [vmem:[%s1831_s27 + $0x98] sm:$0xff] %v942_v40  ;;  %1134 = vst [vmem:[%s1831_s27 + $0x298] sm:$0xff] %v1006_v41  ;;  %v943_v48 = vmax.f32 %v655_v42, 0.0  ;;  %v1007_v49 = vmax.f32 %v815_v43, 0.0  ;;  %v657_v50 = vadd.f32 %v656_v46, %v1825_v45  ;;  %v817_v51 = vadd.f32 %v816_v47, %v1825_v45 }
 0x12d   : > { %v658_v52 = vpop.f32.mrf.mxu0  ;;  %v818_v53 = vpop.f32.mrf.mxu1 }
 0x12e   : > { %1071 = vst [vmem:[%s1831_s27 + $0xa0] sm:$0xff] %v943_v48  ;;  %1135 = vst [vmem:[%s1831_s27 + $0x2a0] sm:$0xff] %v1007_v49  ;;  %v944_v54 = vmax.f32 %v657_v50, 0.0  ;;  %v1008_v55 = vmax.f32 %v817_v51, 0.0  ;;  %v659_v56 = vadd.f32 %v658_v52, %v1821_v44  ;;  %v819_v57 = vadd.f32 %v818_v53, %v1821_v44 }
 0x12f   : > { %v660_v58 = vpop.f32.mrf.mxu0  ;;  %v820_v59 = vpop.f32.mrf.mxu1 }
 0x130   : > { %1072 = vst [vmem:[%s1831_s27 + $0xa8] sm:$0xff] %v944_v54  ;;  %1136 = vst [vmem:[%s1831_s27 + $0x2a8] sm:$0xff] %v1008_v55  ;;  %v945_v60 = vmax.f32 %v659_v56, 0.0  ;;  %v1009_v61 = vmax.f32 %v819_v57, 0.0  ;;  %v661_v62 = vadd.f32 %v660_v58, %v1825_v45  ;;  %v821_v63 = vadd.f32 %v820_v59, %v1825_v45 }
 0x131   : > { %v664_v0 = vpop.f32.mrf.mxu0  ;;  %v824_v1 = vpop.f32.mrf.mxu1 }
 0x132   : > { %1073 = vst [vmem:[%s1831_s27 + $0xb0] sm:$0xff] %v945_v60  ;;  %1137 = vst [vmem:[%s1831_s27 + $0x2b0] sm:$0xff] %v1009_v61  ;;  %v946_v2 = vmax.f32 %v661_v62, 0.0  ;;  %v1010_v3 = vmax.f32 %v821_v63, 0.0  ;;  %v665_v4 = vadd.f32 %v664_v0, %v1821_v44  ;;  %v825_v5 = vadd.f32 %v824_v1, %v1821_v44 }
 0x133   : > { %v666_v6 = vpop.f32.mrf.mxu0  ;;  %v826_v7 = vpop.f32.mrf.mxu1 }
 0x134   : > { %1074 = vst [vmem:[%s1831_s27 + $0xb8] sm:$0xff] %v946_v2  ;;  %1138 = vst [vmem:[%s1831_s27 + $0x2b8] sm:$0xff] %v1010_v3  ;;  %v947_v8 = vmax.f32 %v665_v4, 0.0  ;;  %v1011_v9 = vmax.f32 %v825_v5, 0.0  ;;  %v667_v10 = vadd.f32 %v666_v6, %v1825_v45  ;;  %v827_v11 = vadd.f32 %v826_v7, %v1825_v45 }
 0x135   : > { %v668_v12 = vpop.f32.mrf.mxu0  ;;  %v828_v13 = vpop.f32.mrf.mxu1 }
 0x136   : > { %1075 = vst [vmem:[%s1831_s27 + $0xc0] sm:$0xff] %v947_v8  ;;  %1139 = vst [vmem:[%s1831_s27 + $0x2c0] sm:$0xff] %v1011_v9  ;;  %v948_v14 = vmax.f32 %v667_v10, 0.0  ;;  %v1012_v15 = vmax.f32 %v827_v11, 0.0  ;;  %v669_v16 = vadd.f32 %v668_v12, %v1821_v44  ;;  %v829_v17 = vadd.f32 %v828_v13, %v1821_v44 }
 0x137   : > { %v670_v18 = vpop.f32.mrf.mxu0  ;;  %v830_v19 = vpop.f32.mrf.mxu1 }
 0x138   : > { %1076 = vst [vmem:[%s1831_s27 + $0xc8] sm:$0xff] %v948_v14  ;;  %1140 = vst [vmem:[%s1831_s27 + $0x2c8] sm:$0xff] %v1012_v15  ;;  %v949_v20 = vmax.f32 %v669_v16, 0.0  ;;  %v1013_v21 = vmax.f32 %v829_v17, 0.0  ;;  %v671_v22 = vadd.f32 %v670_v18, %v1825_v45  ;;  %v831_v23 = vadd.f32 %v830_v19, %v1825_v45 }
 0x139   : > { %v674_v24 = vpop.f32.mrf.mxu0  ;;  %v834_v25 = vpop.f32.mrf.mxu1 }
 0x13a   : > { %1077 = vst [vmem:[%s1831_s27 + $0xd0] sm:$0xff] %v949_v20  ;;  %1141 = vst [vmem:[%s1831_s27 + $0x2d0] sm:$0xff] %v1013_v21  ;;  %v950_v26 = vmax.f32 %v671_v22, 0.0  ;;  %v1014_v27 = vmax.f32 %v831_v23, 0.0  ;;  %v675_v28 = vadd.f32 %v674_v24, %v1821_v44  ;;  %v835_v29 = vadd.f32 %v834_v25, %v1821_v44 }
 0x13b   : > { %v676_v30 = vpop.f32.mrf.mxu0  ;;  %v836_v31 = vpop.f32.mrf.mxu1 }
 0x13c   : > { %1078 = vst [vmem:[%s1831_s27 + $0xd8] sm:$0xff] %v950_v26  ;;  %1142 = vst [vmem:[%s1831_s27 + $0x2d8] sm:$0xff] %v1014_v27  ;;  %v951_v32 = vmax.f32 %v675_v28, 0.0  ;;  %v1015_v33 = vmax.f32 %v835_v29, 0.0  ;;  %v677_v34 = vadd.f32 %v676_v30, %v1825_v45  ;;  %v837_v35 = vadd.f32 %v836_v31, %v1825_v45 }
 0x13d   : > { %v678_v36 = vpop.f32.mrf.mxu0  ;;  %v838_v37 = vpop.f32.mrf.mxu1 }
 0x13e   : > { %1079 = vst [vmem:[%s1831_s27 + $0xe0] sm:$0xff] %v951_v32  ;;  %1143 = vst [vmem:[%s1831_s27 + $0x2e0] sm:$0xff] %v1015_v33  ;;  %v952_v38 = vmax.f32 %v677_v34, 0.0  ;;  %v1016_v39 = vmax.f32 %v837_v35, 0.0  ;;  %v679_v40 = vadd.f32 %v678_v36, %v1821_v44  ;;  %v839_v41 = vadd.f32 %v838_v37, %v1821_v44 }
 0x13f   : > { %v680_v42 = vpop.f32.mrf.mxu0  ;;  %v840_v43 = vpop.f32.mrf.mxu1 }
 0x140   : > { %1080 = vst [vmem:[%s1831_s27 + $0xe8] sm:$0xff] %v952_v38  ;;  %1144 = vst [vmem:[%s1831_s27 + $0x2e8] sm:$0xff] %v1016_v39  ;;  %v953_v46 = vmax.f32 %v679_v40, 0.0  ;;  %v1017_v47 = vmax.f32 %v839_v41, 0.0  ;;  %v681_v48 = vadd.f32 %v680_v42, %v1825_v45  ;;  %v841_v49 = vadd.f32 %v840_v43, %v1825_v45 }
 0x141   : > { %v684_v50 = vpop.f32.mrf.mxu0  ;;  %v844_v51 = vpop.f32.mrf.mxu1 }
 0x142   : > { %1081 = vst [vmem:[%s1831_s27 + $0xf0] sm:$0xff] %v953_v46  ;;  %1145 = vst [vmem:[%s1831_s27 + $0x2f0] sm:$0xff] %v1017_v47  ;;  %v954_v52 = vmax.f32 %v681_v48, 0.0  ;;  %v1018_v53 = vmax.f32 %v841_v49, 0.0  ;;  %v685_v54 = vadd.f32 %v684_v50, %v1821_v44  ;;  %v845_v55 = vadd.f32 %v844_v51, %v1821_v44 }
 0x143   : > { %v686_v56 = vpop.f32.mrf.mxu0  ;;  %v846_v57 = vpop.f32.mrf.mxu1 }
 0x144   : > { %1082 = vst [vmem:[%s1831_s27 + $0xf8] sm:$0xff] %v954_v52  ;;  %1146 = vst [vmem:[%s1831_s27 + $0x2f8] sm:$0xff] %v1018_v53  ;;  %v955_v58 = vmax.f32 %v685_v54, 0.0  ;;  %v1019_v59 = vmax.f32 %v845_v55, 0.0  ;;  %v687_v60 = vadd.f32 %v686_v56, %v1825_v45  ;;  %v847_v61 = vadd.f32 %v846_v57, %v1825_v45 }
 0x145   : > { %v688_v62 = vpop.f32.mrf.mxu0  ;;  %v848_v63 = vpop.f32.mrf.mxu1 }
 0x146   : > { %1083 = vst [vmem:[%s1831_s27 + $0x100] sm:$0xff] %v955_v58  ;;  %1147 = vst [vmem:[%s1831_s27 + $0x300] sm:$0xff] %v1019_v59  ;;  %v956_v0 = vmax.f32 %v687_v60, 0.0  ;;  %v1020_v1 = vmax.f32 %v847_v61, 0.0  ;;  %v689_v2 = vadd.f32 %v688_v62, %v1821_v44  ;;  %v849_v3 = vadd.f32 %v848_v63, %v1821_v44 }
 0x147   : > { %v690_v4 = vpop.f32.mrf.mxu0  ;;  %v850_v5 = vpop.f32.mrf.mxu1 }
 0x148   : > { %1084 = vst [vmem:[%s1831_s27 + $0x108] sm:$0xff] %v956_v0  ;;  %1148 = vst [vmem:[%s1831_s27 + $0x308] sm:$0xff] %v1020_v1  ;;  %v957_v6 = vmax.f32 %v689_v2, 0.0  ;;  %v1021_v7 = vmax.f32 %v849_v3, 0.0  ;;  %v691_v8 = vadd.f32 %v690_v4, %v1825_v45  ;;  %v851_v9 = vadd.f32 %v850_v5, %v1825_v45 }
 0x149   : > { %v694_v10 = vpop.f32.mrf.mxu0  ;;  %v854_v11 = vpop.f32.mrf.mxu1 }
 0x14a   : > { %1085 = vst [vmem:[%s1831_s27 + $0x110] sm:$0xff] %v957_v6  ;;  %1149 = vst [vmem:[%s1831_s27 + $0x310] sm:$0xff] %v1021_v7  ;;  %v958_v12 = vmax.f32 %v691_v8, 0.0  ;;  %v1022_v13 = vmax.f32 %v851_v9, 0.0  ;;  %v695_v14 = vadd.f32 %v694_v10, %v1821_v44  ;;  %v855_v15 = vadd.f32 %v854_v11, %v1821_v44 }
 0x14b   : > { %v696_v16 = vpop.f32.mrf.mxu0  ;;  %v856_v17 = vpop.f32.mrf.mxu1 }
 0x14c   : > { %1086 = vst [vmem:[%s1831_s27 + $0x118] sm:$0xff] %v958_v12  ;;  %1150 = vst [vmem:[%s1831_s27 + $0x318] sm:$0xff] %v1022_v13  ;;  %v959_v18 = vmax.f32 %v695_v14, 0.0  ;;  %v1023_v19 = vmax.f32 %v855_v15, 0.0  ;;  %v697_v20 = vadd.f32 %v696_v16, %v1825_v45  ;;  %v857_v21 = vadd.f32 %v856_v17, %v1825_v45 }
 0x14d   : > { %v698_v22 = vpop.f32.mrf.mxu0  ;;  %v858_v23 = vpop.f32.mrf.mxu1 }
 0x14e   : > { %1087 = vst [vmem:[%s1831_s27 + $0x120] sm:$0xff] %v959_v18  ;;  %1151 = vst [vmem:[%s1831_s27 + $0x320] sm:$0xff] %v1023_v19  ;;  %v960_v24 = vmax.f32 %v697_v20, 0.0  ;;  %v1024_v25 = vmax.f32 %v857_v21, 0.0  ;;  %v699_v26 = vadd.f32 %v698_v22, %v1821_v44  ;;  %v859_v27 = vadd.f32 %v858_v23, %v1821_v44 }
 0x14f   : > { %v700_v28 = vpop.f32.mrf.mxu0  ;;  %v860_v29 = vpop.f32.mrf.mxu1 }
 0x150   : > { %1088 = vst [vmem:[%s1831_s27 + $0x128] sm:$0xff] %v960_v24  ;;  %1152 = vst [vmem:[%s1831_s27 + $0x328] sm:$0xff] %v1024_v25  ;;  %v961_v30 = vmax.f32 %v699_v26, 0.0  ;;  %v1025_v31 = vmax.f32 %v859_v27, 0.0  ;;  %v701_v32 = vadd.f32 %v700_v28, %v1825_v45  ;;  %v861_v33 = vadd.f32 %v860_v29, %v1825_v45 }
 0x151   : > { %v704_v34 = vpop.f32.mrf.mxu0  ;;  %v864_v35 = vpop.f32.mrf.mxu1 }
 0x152   : > { %1089 = vst [vmem:[%s1831_s27 + $0x130] sm:$0xff] %v961_v30  ;;  %1153 = vst [vmem:[%s1831_s27 + $0x330] sm:$0xff] %v1025_v31  ;;  %v962_v36 = vmax.f32 %v701_v32, 0.0  ;;  %v1026_v37 = vmax.f32 %v861_v33, 0.0  ;;  %v705_v38 = vadd.f32 %v704_v34, %v1821_v44  ;;  %v865_v39 = vadd.f32 %v864_v35, %v1821_v44 }
 0x153   : > { %v706_v40 = vpop.f32.mrf.mxu0  ;;  %v866_v41 = vpop.f32.mrf.mxu1 }
 0x154   : > { %1090 = vst [vmem:[%s1831_s27 + $0x138] sm:$0xff] %v962_v36  ;;  %1154 = vst [vmem:[%s1831_s27 + $0x338] sm:$0xff] %v1026_v37  ;;  %v963_v42 = vmax.f32 %v705_v38, 0.0  ;;  %v1027_v43 = vmax.f32 %v865_v39, 0.0  ;;  %v707_v46 = vadd.f32 %v706_v40, %v1825_v45  ;;  %v867_v47 = vadd.f32 %v866_v41, %v1825_v45 }
 0x155   : > { %v708_v48 = vpop.f32.mrf.mxu0  ;;  %v868_v49 = vpop.f32.mrf.mxu1 }
 0x156   : > { %1091 = vst [vmem:[%s1831_s27 + $0x140] sm:$0xff] %v963_v42  ;;  %1155 = vst [vmem:[%s1831_s27 + $0x340] sm:$0xff] %v1027_v43  ;;  %v964_v50 = vmax.f32 %v707_v46, 0.0  ;;  %v1028_v51 = vmax.f32 %v867_v47, 0.0  ;;  %v709_v52 = vadd.f32 %v708_v48, %v1821_v44  ;;  %v869_v53 = vadd.f32 %v868_v49, %v1821_v44 }
 0x157   : > { %v710_v54 = vpop.f32.mrf.mxu0  ;;  %v870_v55 = vpop.f32.mrf.mxu1 }
 0x158   : > { %1092 = vst [vmem:[%s1831_s27 + $0x148] sm:$0xff] %v964_v50  ;;  %1156 = vst [vmem:[%s1831_s27 + $0x348] sm:$0xff] %v1028_v51  ;;  %v965_v56 = vmax.f32 %v709_v52, 0.0  ;;  %v1029_v57 = vmax.f32 %v869_v53, 0.0  ;;  %v711_v58 = vadd.f32 %v710_v54, %v1825_v45  ;;  %v871_v59 = vadd.f32 %v870_v55, %v1825_v45 }
 0x159   : > { %v714_v60 = vpop.f32.mrf.mxu0  ;;  %v874_v61 = vpop.f32.mrf.mxu1 }
 0x15a   : > { %1093 = vst [vmem:[%s1831_s27 + $0x150] sm:$0xff] %v965_v56  ;;  %1157 = vst [vmem:[%s1831_s27 + $0x350] sm:$0xff] %v1029_v57  ;;  %v966_v62 = vmax.f32 %v711_v58, 0.0  ;;  %v1030_v63 = vmax.f32 %v871_v59, 0.0  ;;  %v715_v0 = vadd.f32 %v714_v60, %v1821_v44  ;;  %v875_v1 = vadd.f32 %v874_v61, %v1821_v44 }
 0x15b   : > { %v716_v2 = vpop.f32.mrf.mxu0  ;;  %v876_v3 = vpop.f32.mrf.mxu1 }
 0x15c   : > { %1094 = vst [vmem:[%s1831_s27 + $0x158] sm:$0xff] %v966_v62  ;;  %1158 = vst [vmem:[%s1831_s27 + $0x358] sm:$0xff] %v1030_v63  ;;  %v967_v4 = vmax.f32 %v715_v0, 0.0  ;;  %v1031_v5 = vmax.f32 %v875_v1, 0.0  ;;  %v717_v6 = vadd.f32 %v716_v2, %v1825_v45  ;;  %v877_v7 = vadd.f32 %v876_v3, %v1825_v45 }
 0x15d   : > { %v718_v8 = vpop.f32.mrf.mxu0  ;;  %v878_v9 = vpop.f32.mrf.mxu1 }
 0x15e   : > { %1095 = vst [vmem:[%s1831_s27 + $0x160] sm:$0xff] %v967_v4  ;;  %1159 = vst [vmem:[%s1831_s27 + $0x360] sm:$0xff] %v1031_v5  ;;  %v968_v10 = vmax.f32 %v717_v6, 0.0  ;;  %v1032_v11 = vmax.f32 %v877_v7, 0.0  ;;  %v719_v12 = vadd.f32 %v718_v8, %v1821_v44  ;;  %v879_v13 = vadd.f32 %v878_v9, %v1821_v44 }
 0x15f   : > { %v720_v14 = vpop.f32.mrf.mxu0  ;;  %v880_v15 = vpop.f32.mrf.mxu1 }
 0x160   : > { %1096 = vst [vmem:[%s1831_s27 + $0x168] sm:$0xff] %v968_v10  ;;  %1160 = vst [vmem:[%s1831_s27 + $0x368] sm:$0xff] %v1032_v11  ;;  %v969_v16 = vmax.f32 %v719_v12, 0.0  ;;  %v1033_v17 = vmax.f32 %v879_v13, 0.0  ;;  %v721_v18 = vadd.f32 %v720_v14, %v1825_v45  ;;  %v881_v19 = vadd.f32 %v880_v15, %v1825_v45 }
 0x161   : > { %v724_v20 = vpop.f32.mrf.mxu0  ;;  %v884_v21 = vpop.f32.mrf.mxu1 }
 0x162   : > { %1097 = vst [vmem:[%s1831_s27 + $0x170] sm:$0xff] %v969_v16  ;;  %1161 = vst [vmem:[%s1831_s27 + $0x370] sm:$0xff] %v1033_v17  ;;  %v970_v22 = vmax.f32 %v721_v18, 0.0  ;;  %v1034_v23 = vmax.f32 %v881_v19, 0.0  ;;  %v725_v24 = vadd.f32 %v724_v20, %v1821_v44  ;;  %v885_v25 = vadd.f32 %v884_v21, %v1821_v44 }
 0x163   : > { %v726_v26 = vpop.f32.mrf.mxu0  ;;  %v886_v27 = vpop.f32.mrf.mxu1 }
 0x164   : > { %1098 = vst [vmem:[%s1831_s27 + $0x178] sm:$0xff] %v970_v22  ;;  %1162 = vst [vmem:[%s1831_s27 + $0x378] sm:$0xff] %v1034_v23  ;;  %v971_v28 = vmax.f32 %v725_v24, 0.0  ;;  %v1035_v29 = vmax.f32 %v885_v25, 0.0  ;;  %v727_v30 = vadd.f32 %v726_v26, %v1825_v45  ;;  %v887_v31 = vadd.f32 %v886_v27, %v1825_v45 }
 0x165   : > { %v728_v32 = vpop.f32.mrf.mxu0  ;;  %v888_v33 = vpop.f32.mrf.mxu1 }
 0x166   : > { %1099 = vst [vmem:[%s1831_s27 + $0x180] sm:$0xff] %v971_v28  ;;  %1163 = vst [vmem:[%s1831_s27 + $0x380] sm:$0xff] %v1035_v29  ;;  %v972_v34 = vmax.f32 %v727_v30, 0.0  ;;  %v1036_v35 = vmax.f32 %v887_v31, 0.0  ;;  %v729_v36 = vadd.f32 %v728_v32, %v1821_v44  ;;  %v889_v37 = vadd.f32 %v888_v33, %v1821_v44 }
 0x167   : > { %v730_v38 = vpop.f32.mrf.mxu0  ;;  %v890_v39 = vpop.f32.mrf.mxu1 }
 0x168   : > { %1100 = vst [vmem:[%s1831_s27 + $0x188] sm:$0xff] %v972_v34  ;;  %1164 = vst [vmem:[%s1831_s27 + $0x388] sm:$0xff] %v1036_v35  ;;  %v973_v40 = vmax.f32 %v729_v36, 0.0  ;;  %v1037_v41 = vmax.f32 %v889_v37, 0.0  ;;  %v731_v42 = vadd.f32 %v730_v38, %v1825_v45  ;;  %v891_v43 = vadd.f32 %v890_v39, %v1825_v45 }
 0x169   : > { %v734_v46 = vpop.f32.mrf.mxu0  ;;  %v894_v47 = vpop.f32.mrf.mxu1 }
 0x16a   : > { %1101 = vst [vmem:[%s1831_s27 + $0x190] sm:$0xff] %v973_v40  ;;  %1165 = vst [vmem:[%s1831_s27 + $0x390] sm:$0xff] %v1037_v41  ;;  %v974_v48 = vmax.f32 %v731_v42, 0.0  ;;  %v1038_v49 = vmax.f32 %v891_v43, 0.0  ;;  %v735_v50 = vadd.f32 %v734_v46, %v1821_v44  ;;  %v895_v51 = vadd.f32 %v894_v47, %v1821_v44 }
 0x16b   : > { %v736_v52 = vpop.f32.mrf.mxu0  ;;  %v896_v53 = vpop.f32.mrf.mxu1 }
 0x16c   : > { %1102 = vst [vmem:[%s1831_s27 + $0x198] sm:$0xff] %v974_v48  ;;  %1166 = vst [vmem:[%s1831_s27 + $0x398] sm:$0xff] %v1038_v49  ;;  %v975_v54 = vmax.f32 %v735_v50, 0.0  ;;  %v1039_v55 = vmax.f32 %v895_v51, 0.0  ;;  %v737_v56 = vadd.f32 %v736_v52, %v1825_v45  ;;  %v897_v57 = vadd.f32 %v896_v53, %v1825_v45 }
 0x16d   : > { %v738_v58 = vpop.f32.mrf.mxu0  ;;  %v898_v59 = vpop.f32.mrf.mxu1 }
 0x16e   : > { %1103 = vst [vmem:[%s1831_s27 + $0x1a0] sm:$0xff] %v975_v54  ;;  %1167 = vst [vmem:[%s1831_s27 + $0x3a0] sm:$0xff] %v1039_v55  ;;  %v976_v60 = vmax.f32 %v737_v56, 0.0  ;;  %v1040_v61 = vmax.f32 %v897_v57, 0.0  ;;  %v739_v62 = vadd.f32 %v738_v58, %v1821_v44  ;;  %v899_v63 = vadd.f32 %v898_v59, %v1821_v44 }
 0x16f   : > { %v740_v0 = vpop.f32.mrf.mxu0  ;;  %v900_v1 = vpop.f32.mrf.mxu1 }
 0x170   : > { %1104 = vst [vmem:[%s1831_s27 + $0x1a8] sm:$0xff] %v976_v60  ;;  %1168 = vst [vmem:[%s1831_s27 + $0x3a8] sm:$0xff] %v1040_v61  ;;  %v977_v2 = vmax.f32 %v739_v62, 0.0  ;;  %v1041_v3 = vmax.f32 %v899_v63, 0.0  ;;  %v741_v4 = vadd.f32 %v740_v0, %v1825_v45  ;;  %v901_v5 = vadd.f32 %v900_v1, %v1825_v45 }
 0x171   : > { %v744_v6 = vpop.f32.mrf.mxu0  ;;  %v904_v7 = vpop.f32.mrf.mxu1 }
 0x172   : > { %1105 = vst [vmem:[%s1831_s27 + $0x1b0] sm:$0xff] %v977_v2  ;;  %1169 = vst [vmem:[%s1831_s27 + $0x3b0] sm:$0xff] %v1041_v3  ;;  %v978_v8 = vmax.f32 %v741_v4, 0.0  ;;  %v1042_v9 = vmax.f32 %v901_v5, 0.0  ;;  %v745_v10 = vadd.f32 %v744_v6, %v1821_v44  ;;  %v905_v11 = vadd.f32 %v904_v7, %v1821_v44 }
 0x173   : > { %v746_v12 = vpop.f32.mrf.mxu0  ;;  %v906_v13 = vpop.f32.mrf.mxu1 }
 0x174   : > { %1106 = vst [vmem:[%s1831_s27 + $0x1b8] sm:$0xff] %v978_v8  ;;  %1170 = vst [vmem:[%s1831_s27 + $0x3b8] sm:$0xff] %v1042_v9  ;;  %v979_v14 = vmax.f32 %v745_v10, 0.0  ;;  %v1043_v15 = vmax.f32 %v905_v11, 0.0  ;;  %v747_v16 = vadd.f32 %v746_v12, %v1825_v45  ;;  %v907_v17 = vadd.f32 %v906_v13, %v1825_v45 }
 0x175   : > { %v748_v18 = vpop.f32.mrf.mxu0  ;;  %v908_v19 = vpop.f32.mrf.mxu1 }
 0x176   : > { %1107 = vst [vmem:[%s1831_s27 + $0x1c0] sm:$0xff] %v979_v14  ;;  %1171 = vst [vmem:[%s1831_s27 + $0x3c0] sm:$0xff] %v1043_v15  ;;  %v980_v20 = vmax.f32 %v747_v16, 0.0  ;;  %v1044_v21 = vmax.f32 %v907_v17, 0.0  ;;  %v749_v22 = vadd.f32 %v748_v18, %v1821_v44  ;;  %v909_v23 = vadd.f32 %v908_v19, %v1821_v44 }
 0x177   : > { %v750_v24 = vpop.f32.mrf.mxu0  ;;  %v910_v25 = vpop.f32.mrf.mxu1 }
 0x178   : > { %1108 = vst [vmem:[%s1831_s27 + $0x1c8] sm:$0xff] %v980_v20  ;;  %1172 = vst [vmem:[%s1831_s27 + $0x3c8] sm:$0xff] %v1044_v21  ;;  %v981_v26 = vmax.f32 %v749_v22, 0.0  ;;  %v1045_v27 = vmax.f32 %v909_v23, 0.0  ;;  %v751_v28 = vadd.f32 %v750_v24, %v1825_v45  ;;  %v911_v29 = vadd.f32 %v910_v25, %v1825_v45 }
 0x179   : > { %v754_v30 = vpop.f32.mrf.mxu0  ;;  %v914_v31 = vpop.f32.mrf.mxu1 }
 0x17a   : > { %1109 = vst [vmem:[%s1831_s27 + $0x1d0] sm:$0xff] %v981_v26  ;;  %1173 = vst [vmem:[%s1831_s27 + $0x3d0] sm:$0xff] %v1045_v27  ;;  %v982_v32 = vmax.f32 %v751_v28, 0.0  ;;  %v1046_v33 = vmax.f32 %v911_v29, 0.0  ;;  %v755_v34 = vadd.f32 %v754_v30, %v1821_v44  ;;  %v915_v35 = vadd.f32 %v914_v31, %v1821_v44 }
 0x17b   : > { %v756_v36 = vpop.f32.mrf.mxu0  ;;  %v916_v37 = vpop.f32.mrf.mxu1 }
 0x17c   : > { %1110 = vst [vmem:[%s1831_s27 + $0x1d8] sm:$0xff] %v982_v32  ;;  %1174 = vst [vmem:[%s1831_s27 + $0x3d8] sm:$0xff] %v1046_v33  ;;  %v983_v38 = vmax.f32 %v755_v34, 0.0  ;;  %v1047_v39 = vmax.f32 %v915_v35, 0.0  ;;  %v757_v40 = vadd.f32 %v756_v36, %v1825_v45  ;;  %v917_v41 = vadd.f32 %v916_v37, %v1825_v45 }
 0x17d   : > { %v758_v42 = vpop.f32.mrf.mxu0  ;;  %v918_v43 = vpop.f32.mrf.mxu1 }
 0x17e   : > { %1111 = vst [vmem:[%s1831_s27 + $0x1e0] sm:$0xff] %v983_v38  ;;  %1175 = vst [vmem:[%s1831_s27 + $0x3e0] sm:$0xff] %v1047_v39  ;;  %v984_v46 = vmax.f32 %v757_v40, 0.0  ;;  %v1048_v47 = vmax.f32 %v917_v41, 0.0  ;;  %v759_v48 = vadd.f32 %v758_v42, %v1821_v44  ;;  %v919_v49 = vadd.f32 %v918_v43, %v1821_v44 }
 0x17f   : > { %v760_v50 = vpop.f32.mrf.mxu0  ;;  %v920_v51 = vpop.f32.mrf.mxu1 }
 0x180   : > { %1112 = vst [vmem:[%s1831_s27 + $0x1e8] sm:$0xff] %v984_v46  ;;  %1176 = vst [vmem:[%s1831_s27 + $0x3e8] sm:$0xff] %v1048_v47  ;;  %v985_v52 = vmax.f32 %v759_v48, 0.0  ;;  %v1049_v53 = vmax.f32 %v919_v49, 0.0  ;;  %v761_v54 = vadd.f32 %v760_v50, %v1825_v45  ;;  %v921_v55 = vadd.f32 %v920_v51, %v1825_v45 }
 0x182   : > { %1113 = vst [vmem:[%s1831_s27 + $0x1f0] sm:$0xff] %v985_v52  ;;  %1177 = vst [vmem:[%s1831_s27 + $0x3f0] sm:$0xff] %v1049_v53  ;;  %v986_v44 = vmax.f32 %v761_v54, 0.0  ;;  %v1050_v56 = vmax.f32 %v921_v55, 0.0 }
 0x184   : > { %1114 = vst [vmem:[%s1831_s27 + $0x1f8] sm:$0xff] %v986_v44  ;;  %1178 = vst [vmem:[%s1831_s27 + $0x3f8] sm:$0xff] %v1050_v56 }
 0x185   : > { %1544 = shalt.err (!%p1541_p3)
}
 0x186   : > { %s1545_s10 = scalar_lea.hbm %s2086_s5, 16384  ;;  %s1549_s19 = scalar_lea.hbm %s2139_s3, 98304 }
 0x187   : > { %p1546_p2 = scmp.ne.s32.totalorder %s2086_s5, %s1545_s10  ;;  %p1550_p7 = scmp.lt.s32.totalorder %s2086_s5, %s2139_s3 }
 0x188   : > { %p1551_p6 = scmp.lt.s32.totalorder %s1549_s19, %s1545_s10 }
 0x189   : > { %p1547_p4 = pnand %p1546_p2, %p1667_p5 }
 0x18a   : > { %p1552_p9 = por %p1551_p6, %p1550_p7 }
 0x18b   : > { %p1548_p13 = pneg %p1547_p4 }
 0x18d   : > { %p1553_p10 = pnand %p1552_p9, %p1548_p13 }
 0x18f   : > { %1556 = shalt.err (!%p1553_p10)
}
 0x190   : > { %s1607_s25 = smov 256   ;;  %s1608_s26 = smov 16  }
 0x191   : > { %1381 = dma.vmem_to_hbm [thread:$0]  (%p1667_p5), %s2088_s29, 16384, %s2086_s5, %s2096_s16, %s1607_s25, %s1607_s25, %s1608_s26  }
 0x192 PF: > { %p1398_p12 = scmp.ge.s32.totalorder %s1599_s15, 2  ;;  %s1209_s27 = sand.u32 1, %s1587_s12  }
 0x193   : > { %p2149_p8 = scmp.ne.s32.totalorder %s2142_s23, 0  ;;  %s1210_s28 = scalar_lea.sflag [#allocation4], %s1209_s27 }
 0x195   : > { %p1391_p11 = pnand %p1398_p12, %p2149_p8 }
 0x197   : > { %p1392_p0 = pneg %p1391_p11 }
 0x199   : > { %1582 = dma.done.wait (%p1392_p0), %s1210_s28, 16384  }
 0x19a   : > { %1584 = vsyncadd (%p1392_p0), %s1210_s28, 4294950912  ;;  %p15_p1 = scmp.ge.s32.totalorder %s1654_s18, 8   ;;  %s2150_s12 = smov %s1591_s13 }
 0x19b   : > { %s2151_s13 = smov %s1595_s14  ;;  %s2152_s14 = smov %s1665_s21 }
 0x19c   : > { %s2153_s15 = smov %s1654_s18  ;;  %17 = sbr.rel (!%p15_p1) target bundleno = 5 (0x5), region = 76 }
 0x1a1   :  { %1215 = vsyncpa [#allocation3], 1 }
 0x1a2   :  { %1217 = vsyncpa [#allocation3 + $0x1], 1 }
 0x1a3   :  { %1218 = vsyncpa [#allocation6], 1 }
 0x1a4   :  { %1219 = vsyncpa [#allocation4], 1 }
 0x1a5   :  { %1221 = vsyncpa [#allocation4 + $0x1], 1 }

</bundles_post_ra>
